<compile_context>
chip_gen: v5e
topology: v5e:2x2
jax: 0.10.0
libtpu: 0.0.40
codegen_flags: <defaults>
</compile_context>

<pallas_src>
import jax
import jax.numpy as jnp
from jax import lax
from jax.experimental import pallas as pl
from jax.experimental.pallas import tpu as pltpu


def _linear_kernel(x_ref, w_ref, b_ref, o_ref):
    # x_ref: (B, H), w_ref: (O, H), b_ref: (1, O), o_ref: (B, O)
    # Contract on the last dim of both operands -> MXU, no transpose.
    acc = lax.dot_general(
        x_ref[...],
        w_ref[...],
        dimension_numbers=(((1,), (1,)), ((), ())),
        precision=lax.Precision.HIGHEST,          # true f32 fidelity vs nn.Linear
        preferred_element_type=jnp.float32,
    )
    o_ref[...] = (acc + b_ref[...]).astype(o_ref.dtype)


def server_model_forward(x, weight, bias):
    """x: (B, H) f32, weight: (O, H) f32 (PyTorch layout), bias: (O,) f32 -> (B, O) f32."""
    B, H = x.shape
    O, H2 = weight.shape
    assert H == H2, "hidden_size mismatch"

    # Zero-copy reshape; no per-call padding of parameters (perf review item 1/2/5).
    bias_row = bias.reshape(1, O)

    cost = pl.CostEstimate(
        flops=2 * B * H * O,
        transcendentals=0,
        bytes_accessed=4 * (B * H + O * H + O + B * O),
    )

    return pl.pallas_call(
        _linear_kernel,
        out_shape=jax.ShapeDtypeStruct((B, O), x.dtype),
        in_specs=[
            pl.BlockSpec(memory_space=pltpu.MemorySpace.VMEM),
            pl.BlockSpec(memory_space=pltpu.MemorySpace.VMEM),
            pl.BlockSpec(memory_space=pltpu.MemorySpace.VMEM),
        ],
        out_specs=pl.BlockSpec(memory_space=pltpu.MemorySpace.VMEM),
        cost_estimate=cost,
    )(x, weight, bias_row)


if __name__ == "__main__":
    # Small shapes consistent with the module's forward: x (batch, hidden).
    batch, hidden_size, output_size = 2, 32, 16

    key = jax.random.PRNGKey(0)
    kx, kw, kb = jax.random.split(key, 3)

    # Deterministic synthetic parameters (PyTorch-like uniform init, bound 1/sqrt(hidden)).
    bound = 1.0 / (hidden_size ** 0.5)
    weight = jax.random.uniform(kw, (output_size, hidden_size), jnp.float32, -bound, bound)
    bias = jax.random.uniform(kb, (output_size,), jnp.float32, -bound, bound)
    x = jax.random.normal(kx, (batch, hidden_size), jnp.float32)

    out = server_model_forward(x, weight, bias)
    out = jax.block_until_ready(out)

    # Sanity check against plain-JAX reference (f32, highest precision).
    ref = jnp.dot(x, weight.T, precision=lax.Precision.HIGHEST) + bias
    assert out.shape == (batch, output_size)
    assert jnp.allclose(out, ref, atol=1e-5, rtol=1e-5)

    print("KERNEL_OK")
</pallas_src>

<mosaic_0001>
module attributes {stable_mosaic.version = 11 : i64} {
  func.func @_linear_kernel(%arg0: memref<2x32xf32, #tpu.memory_space<vmem>>, %arg1: memref<16x32xf32, #tpu.memory_space<vmem>>, %arg2: memref<1x16xf32, #tpu.memory_space<vmem>>, %arg3: memref<2x16xf32, #tpu.memory_space<vmem>>) attributes {dimension_semantics = [], scalar_prefetch = 0 : i64, scratch_operands = 0 : i64, tpu.core_type = #tpu.core_type<tc>} {
    %c0 = arith.constant 0 : index
    %c0_0 = arith.constant 0 : index
    %0 = vector.load %arg0[%c0, %c0_0] : memref<2x32xf32, #tpu.memory_space<vmem>>, vector<2x32xf32>
    %c0_1 = arith.constant 0 : index
    %c0_2 = arith.constant 0 : index
    %1 = vector.load %arg1[%c0_1, %c0_2] : memref<16x32xf32, #tpu.memory_space<vmem>>, vector<16x32xf32>
    %cst = arith.constant dense<0.000000e+00> : vector<2x16xf32>
    %2 = tpu.matmul %0, %1, %cst {dimension_numbers = #tpu.dot_dimension_numbers<[1], [1], [0], [0], [0, 0, 1, 0], [], []>, precision = #tpu.contract_precision<fp32>} : vector<2x32xf32>, vector<16x32xf32>, vector<2x16xf32> -> vector<2x16xf32>
    %c0_3 = arith.constant 0 : index
    %c0_4 = arith.constant 0 : index
    %3 = vector.load %arg2[%c0_3, %c0_4] : memref<1x16xf32, #tpu.memory_space<vmem>>, vector<1x16xf32>
    %4 = vector.broadcast %3 : vector<1x16xf32> to vector<2x16xf32>
    %5 = arith.addf %2, %4 : vector<2x16xf32>
    %c0_5 = arith.constant 0 : index
    %c0_6 = arith.constant 0 : index
    %6 = vector.load %arg3[%c0_5, %c0_6] : memref<2x16xf32, #tpu.memory_space<vmem>>, vector<2x16xf32>
    tpu.vector_store %arg3[%c0_5, %c0_6], %5 {strides = array<i32>} : memref<2x16xf32, #tpu.memory_space<vmem>>, vector<2x16xf32>,
    return
  }
}

</mosaic_0001>

<bundles_post_ra>
// kernel: tpu_custom_call.1
= control target key start
LH: loop header
LB: loop body
LE: loop exit
PB: predicated region body
PF: predicated region fallthrough
CT: control target
= control target key end

     0   :  { %8 = vsyncpa [#allocation3], 0  ;;  %s362_s0 = inlined_call_operand.hbm [shape: f32[2,32], index: 0, kind: input, shape index: {}]   ;;  %s363_s1 = inlined_call_operand.hbm [shape: f32[16,32], index: 1, kind: input, shape index: {}]   ;;  %s364_s2 = inlined_call_operand.vmem [shape: f32[1,16], index: 2, kind: input, shape index: {}]   ;;  %s365_s3 = inlined_call_operand.hbm [shape: f32[2,16], index: 3, kind: output, shape index: {}]  }
   0x1   :  { %9 = vsyncpa [#allocation6], 0 }
   0x2   :  { %10 = vsyncpa [#allocation4], 0  ;;  %s16_s14 = sshll.u32 %s362_s0, 4  ;;  %s325_s15 = smov [#allocation2]   ;;  %s17_s14 = int_to_ptr.hbm [resolvable:$true] %s16_s14 }
   0x3   :  { %s18_s16 = sshll.u32 %s325_s15, 4  ;;  %s26_s19 = sshll.u32 %s363_s1, 4  ;;  %s19_s16 = int_to_ptr.vmem [resolvable:$true] %s18_s16  ;;  %s27_s19 = int_to_ptr.hbm [resolvable:$true] %s26_s19 }
   0x4   :  { %21 = dma.hbm_to_vmem [thread:$0]  %s17_s14, 32, %s19_s16, [#allocation3]  }
   0x5   :  { %s326_s20 = smov [#allocation5]   ;;  %s327_s22 = smov 128  }
   0x6   :  { %s28_s21 = sshll.u32 %s326_s20, 4  ;;  %s328_s23 = smov 8   ;;  %s29_s21 = int_to_ptr.vmem [resolvable:$true] %s28_s21 }
   0x7   :  { %34 = dma.hbm_to_vmem [thread:$0]  %s27_s19, 256, %s29_s21, [#allocation6], %s327_s22, %s327_s22, %s328_s23  }
   0x8   :  { %319 = dma.done.wait [#allocation3], 32  }
   0x9   :  { %320 = vsyncadd [#allocation3], 4294967264 }
   0xa   :  { %321 = dma.done.wait [#allocation6], 256  }
   0xb   :  { %322 = vsyncadd [#allocation6], 4294967040  ;;  %vm52_vm0 = vcmask 261120   ;;  %v47_v0 = vld [vmem:[#allocation5 + $0x8] sm:$0xff]  ;;  %v46_v1 = vld [vmem:[#allocation5] sm:$0xff]  ;;  %s329_s24 = smov [#allocation7]  }
   0xc   :  { %v45_v2 = vld [vmem:[#allocation2] sm:$0x3]  ;;  %v60_v3 = vsel %vm52_vm0, %v47_v0, 0  ;;  %v57_v4 = vsel %vm52_vm0, %v46_v1, 0  ;;  %s228_s25 = sshll.u32 %s329_s24, 4  ;;  %s230_s28 = sshll.u32 %s365_s3, 4  ;;  %s229_s25 = int_to_ptr.vmem [resolvable:$true] %s228_s25  ;;  %s231_s28 = int_to_ptr.hbm [resolvable:$true] %s230_s28 }
   0xd   :  { %v54_v5 = vsel %vm52_vm0, %v45_v2, 0  ;;  %v76_v6 = vand.u32 4294901760, %v60_v3  ;;  %v78_v7 = vand.u32 4294901760, %v57_v4  ;;  %v246_v21 = vld [vmem:[%s364_s2] ss:$0 sm:$0xff]  ;;  %vm221_vm1 = vcmask 123904  }
   0xe   :  { %v80_v8 = vand.u32 4294901760, %v54_v5 }
   0xf   :  { %v104_v9 = vsub.f32 %v60_v3, %v76_v6  ;;  %77 = vmatpush.xpose.msra.mxu0 %v76_v6  ;;  %161 = vmatpush.xpose.msra.mxu3 %v76_v6  ;;  %v110_v10 = vsub.f32 %v57_v4, %v78_v7 }
  0x10   :  { %v81_v11 = vsub.f32 %v54_v5, %v80_v8 }
  0x11   :  { %136 = vmatpush.xpose.msra.mxu2 %v104_v9  ;;  %v105_v12 = vand.u32 4294901760, %v104_v9  ;;  %v111_v13 = vand.u32 4294901760, %v110_v10 }
  0x12   :  { %v82_v14 = vand.u32 4294901760, %v81_v11 }
  0x13   :  { %v106_v15 = vsub.f32 %v104_v9, %v105_v12  ;;  %79 = vmatpush.xpose.msra.mxu0 %v78_v7  ;;  %163 = vmatpush.xpose.msra.mxu3 %v78_v7  ;;  %v112_v16 = vsub.f32 %v110_v10, %v111_v13 }
  0x14   :  { %v83_v17 = vsub.f32 %v81_v11, %v82_v14 }
  0x15   :  { %v107_v18 = vand.u32 4294901760, %v106_v15  ;;  %139 = vmatpush.xpose.msra.mxu2 %v110_v10  ;;  %v113_v20 = vand.u32 4294901760, %v112_v16 }
  0x16   :  { %v84_v19 = vand.u32 4294901760, %v83_v17  ;;  %167 = vmatmul.f32.vlgmr.msra.gmra.mxu3 %v82_v14 }
  0x17   :  { %188 = vmatpush.xpose.msrb.mxu0 %v105_v12  ;;  %108 = vmatpush.xpose.msra.mxu1 %v107_v18 }
  0x18   :  { %85 = vmatmul.f32.vlgmr.msra.gmra.mxu0 %v84_v19  ;;  %142 = vmatmul.f32.vlgmr.msra.gmra.mxu2 %v81_v11 }
  0x1b   :  { %192 = vmatpush.xpose.msrb.mxu0 %v111_v13  ;;  %114 = vmatpush.xpose.msra.mxu1 %v113_v20 }
  0x1e   :  { %116 = vmatmul.f32.vlgmr.msra.gmra.mxu1 %v80_v8 }
  0x1f   :  { %213 = vmatpush.xpose.msrb.mxu1 %v76_v6 }
  0x20   :  { %194 = vmatmul.f32.vlgmr.msrb.gmra.mxu0 %v80_v8 }
  0x23   :  { %215 = vmatpush.xpose.msrb.mxu1 %v78_v7 }
  0x26   :  { %217 = vmatmul.f32.vlgmr.msrb.gmra.mxu1 %v80_v8 }
  0x95   :  { %v86_v22 = vpop.f32.mrf.mxu0 }
  0x96   :  { %v87_v23 = vadd.f32 %v246_v21, %v86_v22 }
  0x99   :  { %v168_v27 = vpop.f32.mrf.mxu3 }
  0x9b   :  { %v117_v24 = vpop.f32.mrf.mxu1  ;;  %v143_v25 = vpop.f32.mrf.mxu2 }
  0x9c   :  { %v118_v26 = vadd.f32 %v117_v24, %v87_v23 }
  0x9d   :  { %v195_v29 = vpop.f32.mrf.mxu0 }
  0x9e   :  { %v144_v28 = vadd.f32 %v143_v25, %v118_v26 }
  0xa0   :  { %v169_v30 = vadd.f32 %v168_v27, %v144_v28 }
  0xa2   :  { %v196_v31 = vadd.f32 %v195_v29, %v169_v30 }
  0xa3   :  { %v218_v32 = vpop.f32.mrf.mxu1 }
  0xa4   :  { %v219_v33 = vadd.f32 %v218_v32, %v196_v31 }
  0xa6   :  { %222 = vst.msk [vmem:[#allocation7] sm:$0x3] %vm221_vm1, %v219_v33 }
  0xa7   :  { %233 = dma.vmem_to_hbm [thread:$0]  %s229_s25, 32, %s231_s28, [#allocation4]  }
  0xa8   :  { %323 = dma.done.wait [#allocation4], 32  }
  0xa9   :  { %324 = vsyncadd [#allocation4], 4294967264 }
  0xaa   :  { %238 = vsyncpa [#allocation3], 1 }
  0xab   :  { %239 = vsyncpa [#allocation6], 1 }
  0xac   :  { %240 = vsyncpa [#allocation4], 1 }

</bundles_post_ra>
